<compile_context>
chip_gen: v7x
topology: tpu7x:2x2x1
jax: 0.10.0
libtpu: 0.0.40
codegen_flags: <defaults>
</compile_context>

<pallas_src>
import functools

import numpy as np
import jax
import jax.numpy as jnp
from jax.experimental import pallas as pl
from jax.experimental.pallas import tpu as pltpu


def _round_up(x, m):
    return ((x + m - 1) // m) * m


# ---------------------------------------------------------------------------
# Shared step body (pure jnp on VMEM-resident, lane-padded operands).
# ---------------------------------------------------------------------------
def _cell_body(x, h, pre, wx, wh, b, w_acell_bd, w_ain_til, v_mat, r_mat, s_mat,
               tile_eye, *, n_cells, nhp, hp):
    """One MultiCell_layer step. Returns a (B, 2*hp + nhp + npad) slab:
    [hidden_outputs | cell_state_c | cell_states (cell-major) | probs], each block
    starting at a 128-lane boundary (padded lanes hold zeros / don't-care values)."""
    f32, bf16 = jnp.float32, jnp.bfloat16

    # Fused gate + composition matmul: bf16 operands, f32 accumulate.
    net = (jnp.dot(x.astype(bf16), wx, preferred_element_type=f32)
           + jnp.dot(h.astype(bf16), wh, preferred_element_type=f32)
           + b)

    # Per-cell gates: whole 128-lane blocks -> one sigmoid / one tanh covers all cells.
    ig = jax.nn.sigmoid(net[:, :nhp])
    ci = jnp.tanh(net[:, nhp:2 * nhp])

    # cell_state_pre tiled across the cell blocks with one (exact, f32) MXU push.
    pre_tiled = jnp.dot(pre, tile_eye, preferred_element_type=f32)          # (B, nhp)
    cs = ig * ci + (1.0 - ig) * pre_tiled                                   # (B, nhp)

    # Composition cell (each gate in its own 128-lane block).
    o = 2 * nhp
    comp_ig = jax.nn.sigmoid(net[:, o:o + hp])
    comp_og = jax.nn.sigmoid(net[:, o + hp:o + 2 * hp])
    comp_cc = jnp.tanh(net[:, o + 2 * hp:o + 3 * hp])

    # Additive attention for all cells in two MXU pushes (tiled input-proj + block-diag
    # cell-proj), then one push against the block-"v" matrix for the scores.
    a = (jnp.dot(comp_cc.astype(bf16), w_ain_til, preferred_element_type=f32)
         + jnp.dot(cs.astype(bf16), w_acell_bd, preferred_element_type=f32))  # (B, Ap)
    s = jnp.tanh(a)
    scores = jnp.dot(s.astype(bf16), v_mat, preferred_element_type=f32)       # (B, npad)

    col = jax.lax.broadcasted_iota(jnp.int32, scores.shape, 1)
    scores = jnp.where(col < n_cells, scores, -1e30)          # mask padded cell lanes
    m = jnp.max(scores, axis=-1, keepdims=True)
    e = jnp.exp(scores - m)
    probs = e * pl.reciprocal(jnp.sum(e, axis=-1, keepdims=True), approx=True)  # (B, npad)

    # atten[b, j] = sum_c probs[b, c] * cs[b, c*H + j]   (two MXU pushes, no XLU shuffles)
    probs_rep = jnp.dot(probs.astype(bf16), r_mat, preferred_element_type=f32)  # (B, nhp)
    atten = jnp.dot((probs_rep * cs).astype(bf16), s_mat,
                    preferred_element_type=f32)                                  # (B, hp)

    csc = (1.0 - comp_ig) * pre_tiled[:, :hp] + comp_ig * atten  # valid in lanes [:H]
    hid = comp_og * jnp.tanh(csc)

    return jnp.concatenate([hid, csc, cs, probs], axis=-1)


# ---------------------------------------------------------------------------
# Single-step kernel (grid=()): matches MultiCell_layer.forward exactly.
# ---------------------------------------------------------------------------
def _step_kernel(x_ref, h_ref, pre_ref, wx_ref, wh_ref, b_ref, wbd_ref, wtil_ref,
                 vmat_ref, rmat_ref, smat_ref, teye_ref, out_ref, *, n_cells, nhp, hp):
    out_ref[...] = _cell_body(
        x_ref[...], h_ref[...], pre_ref[...], wx_ref[...], wh_ref[...], b_ref[...],
        wbd_ref[...], wtil_ref[...], vmat_ref[...], rmat_ref[...], smat_ref[...],
        teye_ref[...], n_cells=n_cells, nhp=nhp, hp=hp)


@functools.partial(jax.jit, static_argnames=("hidden_size", "n_cells"))
def _multicell_step(x, h, pre, wx, wh, b, wbd, wtil, vmat, rmat, smat, teye, *,
                    hidden_size, n_cells):
    B = x.shape[0]
    H, N = hidden_size, n_cells
    hp = _round_up(H, 128)
    nhp = _round_up(N * H, 128)
    npad = _round_up(N, 128)
    out_w = 2 * hp + nhp + npad

    vmem = lambda: pl.BlockSpec(memory_space=pltpu.MemorySpace.VMEM)
    out = pl.pallas_call(
        functools.partial(_step_kernel, n_cells=N, nhp=nhp, hp=hp),
        out_shape=jax.ShapeDtypeStruct((B, out_w), jnp.float32),
        in_specs=[vmem() for _ in range(12)],
        out_specs=vmem(),
    )(x, h, pre, wx, wh, b, wbd, wtil, vmat, rmat, smat, teye)

    hid = out[:, :H]
    csc = out[:, hp:hp + H]
    cs = out[:, 2 * hp:2 * hp + N * H].reshape(B, N, H)
    probs = out[:, 2 * hp + nhp:2 * hp + nhp + N]
    return hid, csc, cs, probs


# ---------------------------------------------------------------------------
# Fused time-loop kernel (grid=(T,)): weights stay VMEM-resident, h/c carried in scratch.
# Recurrence: (h_{t}, c_{t}) = layer(x_t, h_{t-1}, c_{t-1}).
# ---------------------------------------------------------------------------
def _seq_kernel(x_ref, h0_ref, c0_ref, wx_ref, wh_ref, b_ref, wbd_ref, wtil_ref,
                vmat_ref, rmat_ref, smat_ref, teye_ref, out_ref, h_scr, c_scr, *,
                n_cells, nhp, hp):
    t = pl.program_id(0)

    @pl.when(t == 0)
    def _():
        h_scr[...] = h0_ref[...]
        c_scr[...] = c0_ref[...]

    row = _cell_body(
        x_ref[0], h_scr[...], c_scr[...], wx_ref[...], wh_ref[...], b_ref[...],
        wbd_ref[...], wtil_ref[...], vmat_ref[...], rmat_ref[...], smat_ref[...],
        teye_ref[...], n_cells=n_cells, nhp=nhp, hp=hp)

    out_ref[0] = row
    # Carry padded hid/csc blocks; padded lanes multiply zero weight rows next step.
    h_scr[...] = row[:, :hp]
    c_scr[...] = row[:, hp:2 * hp]


def _resident_spec(shape):
    zeros = (0,) * len(shape)
    return pl.BlockSpec(shape, lambda t, z=zeros: z)   # same block every step -> no re-DMA


@functools.partial(jax.jit, static_argnames=("hidden_size", "n_cells"))
def _multicell_sequence(x_seq, h0, c0, wx, wh_p, b, wbd, wtil, vmat, rmat, smat,
                        teye_p, *, hidden_size, n_cells):
    T, B, Din = x_seq.shape
    H, N = hidden_size, n_cells
    hp = _round_up(H, 128)
    nhp = _round_up(N * H, 128)
    npad = _round_up(N, 128)
    out_w = 2 * hp + nhp + npad

    h0p = jnp.pad(h0, ((0, 0), (0, hp - H)))
    c0p = jnp.pad(c0, ((0, 0), (0, hp - H)))

    weights = (wx, wh_p, b, wbd, wtil, vmat, rmat, smat, teye_p)
    out = pl.pallas_call(
        functools.partial(_seq_kernel, n_cells=N, nhp=nhp, hp=hp),
        out_shape=jax.ShapeDtypeStruct((T, B, out_w), jnp.float32),
        grid=(T,),
        in_specs=[pl.BlockSpec((1, B, Din), lambda t: (t, 0, 0)),
                  _resident_spec(h0p.shape), _resident_spec(c0p.shape)]
                 + [_resident_spec(w.shape) for w in weights],
        out_specs=pl.BlockSpec((1, B, out_w), lambda t: (t, 0, 0)),
        scratch_shapes=[pltpu.VMEM((B, hp), jnp.float32),
                        pltpu.VMEM((B, hp), jnp.float32)],
        compiler_params=pltpu.CompilerParams(dimension_semantics=("arbitrary",)),
    )(x_seq, h0p, c0p, *weights)

    hid = out[:, :, :H]
    csc = out[:, :, hp:hp + H]
    cs = out[:, :, 2 * hp:2 * hp + N * H].reshape(T, B, N, H)
    probs = out[:, :, 2 * hp + nhp:2 * hp + nhp + N]
    return hid, csc, cs, probs


# ---------------------------------------------------------------------------
# Module wrapper: parameters + per-domain fused/lane-padded weight caches (built once).
# ---------------------------------------------------------------------------
class MultiCellLayerPallas:
    """JAX/Pallas port of MultiCell_layer. Parameters initialized nn.Linear-style
    (uniform(-1/sqrt(fan_in), 1/sqrt(fan_in)))."""

    def __init__(self, input_size, hidden_size, cell_num,
                 entity_mask_S, entity_mask_T, use_bias=True, key=None):
        self.input_size = input_size
        self.hidden_size = hidden_size
        self.cell_num = cell_num
        self.entity_mask_S = list(entity_mask_S)
        self.entity_mask_T = list(entity_mask_T)
        self.use_bias = use_bias

        key = jax.random.PRNGKey(0) if key is None else key
        ks = jax.random.split(key, 10)
        H, Din = hidden_size, input_size
        bx = 1.0 / (Din ** 0.5)
        bh = 1.0 / (H ** 0.5)
        bv = 1.0 / ((2 * H) ** 0.5)

        # Compute_Gate per-cell weights, (in, out) layout; cols [:H]=input_gate, [H:]=cell_input.
        self.Wx_gate = jax.random.uniform(ks[0], (cell_num, Din, 2 * H), jnp.float32, -bx, bx)
        self.Wh_gate = jax.random.uniform(ks[1], (cell_num, H, 2 * H), jnp.float32, -bh, bh)
        self.b_gate = (jax.random.uniform(ks[2], (cell_num, 2 * H), jnp.float32, -bx, bx)
                       if use_bias else jnp.zeros((cell_num, 2 * H), jnp.float32))

        # Composition_Cell (bias on the x path only).
        self.Wx_comp = jax.random.uniform(ks[3], (Din, 3 * H), jnp.float32, -bx, bx)
        self.Wh_comp = jax.random.uniform(ks[4], (H, 3 * H), jnp.float32, -bh, bh)
        self.b_comp = (jax.random.uniform(ks[5], (3 * H,), jnp.float32, -bx, bx)
                       if use_bias else jnp.zeros((3 * H,), jnp.float32))

        # Compute_Add_Attention. Torch deep-copies S projections into T (same values,
        # independent parameters) and re-inits atten_v_S / atten_v_T independently.
        self.W_inproj_S = jax.random.uniform(ks[6], (H, 2 * H), jnp.float32, -bh, bh)
        self.W_cellproj_S = jax.random.uniform(ks[7], (H, 2 * H), jnp.float32, -bh, bh)
        self.W_inproj_T = jnp.array(self.W_inproj_S)        # independent copy (not aliased)
        self.W_cellproj_T = jnp.array(self.W_cellproj_S)
        self.atten_v_S = jax.random.uniform(ks[8], (2 * H,), jnp.float32, -bv, bv)
        self.atten_v_T = jax.random.uniform(ks[9], (2 * H,), jnp.float32, -bv, bv)

        # Quirk in the original forward: for 'Source' BOTH attention projections use
        # input_proj_S (cell_proj_S is never used there).
        self._fused = {
            'Source': self._build_domain(self.entity_mask_S, self.W_inproj_S,
                                         self.W_inproj_S, self.atten_v_S),
            'Target': self._build_domain(self.entity_mask_T, self.W_inproj_T,
                                         self.W_cellproj_T, self.atten_v_T),
        }

    def _build_domain(self, mask, W_ain, W_acell, atten_v):
        H, Din = self.hidden_size, self.input_size
        idx = [i for i in range(self.cell_num) if mask[i] == 1]
        N = len(idx)
        hp = _round_up(H, 128)
        nhp = _round_up(N * H, 128)
        ap = _round_up(N * 2 * H, 128)
        npad = _round_up(N, 128)
        C = 2 * nhp + 3 * hp

        wxg = np.asarray(self.Wx_gate); whg = np.asarray(self.Wh_gate)
        bg = np.asarray(self.b_gate)
        wxc = np.asarray(self.Wx_comp); whc = np.asarray(self.Wh_comp)
        bc = np.asarray(self.b_comp)
        wai = np.asarray(W_ain); wac = np.asarray(W_acell); av = np.asarray(atten_v)

        # Fused, reordered, lane-padded gate/composition slab.
        wx = np.zeros((Din, C), np.float32)
        wh = np.zeros((H, C), np.float32)
        b = np.zeros((1, C), np.float32)
        for k, c in enumerate(idx):
            wx[:, k * H:(k + 1) * H] = wxg[c][:, :H]                 # input-gate block
            wh[:, k * H:(k + 1) * H] = whg[c][:, :H]
            b[0, k * H:(k + 1) * H] = bg[c][:H]
            wx[:, nhp + k * H:nhp + (k + 1) * H] = wxg[c][:, H:]     # cell-input block
            wh[:, nhp + k * H:nhp + (k + 1) * H] = whg[c][:, H:]
            b[0, nhp + k * H:nhp + (k + 1) * H] = bg[c][H:]
        o = 2 * nhp
        for j in range(3):                                           # comp_ig | comp_og | comp_cc
            wx[:, o + j * hp:o + j * hp + H] = wxc[:, j * H:(j + 1) * H]
            wh[:, o + j * hp:o + j * hp + H] = whc[:, j * H:(j + 1) * H]
            b[0, o + j * hp:o + j * hp + H] = bc[j * H:(j + 1) * H]

        # Attention helper matrices (all zero-padded -> padded lanes can't leak).
        w_acell_bd = np.zeros((nhp, ap), np.float32)   # block-diagonal cell projection
        w_ain_til = np.zeros((hp, ap), np.float32)     # input projection tiled per cell
        v_mat = np.zeros((ap, npad), np.float32)       # block-"v" score matrix
        r_mat = np.zeros((npad, nhp), np.float32)      # probs -> per-lane repeat
        s_mat = np.zeros((nhp, hp), np.float32)        # stacked identities: sum over cells
        teye = np.zeros((H, nhp), np.float32)          # cell_state_pre tiling
        eye = np.eye(H, dtype=np.float32)
        for k in range(N):
            w_acell_bd[k * H:(k + 1) * H, k * 2 * H:(k + 1) * 2 * H] = wac
            w_ain_til[:H, k * 2 * H:(k + 1) * 2 * H] = wai
            v_mat[k * 2 * H:(k + 1) * 2 * H, k] = av
            r_mat[k, k * H:(k + 1) * H] = 1.0
            s_mat[k * H:(k + 1) * H, :H] = eye
            teye[:, k * H:(k + 1) * H] = eye

        # Padded-row variants for the sequence kernel (h/c carried as (B, hp) blocks).
        wh_p = np.zeros((hp, C), np.float32); wh_p[:H] = wh
        teye_p = np.zeros((hp, nhp), np.float32); teye_p[:H] = teye

        bf = jnp.bfloat16
        return dict(
            n_cells=N,
            wx=jnp.asarray(wx, bf), wh=jnp.asarray(wh, bf), wh_p=jnp.asarray(wh_p, bf),
            b=jnp.asarray(b),                                   # f32 (added post-accumulate)
            wbd=jnp.asarray(w_acell_bd, bf), wtil=jnp.asarray(w_ain_til, bf),
            vmat=jnp.asarray(v_mat, bf), rmat=jnp.asarray(r_mat, bf),
            smat=jnp.asarray(s_mat, bf),
            teye=jnp.asarray(teye), teye_p=jnp.asarray(teye_p),  # f32 (exact pre copy)
        )

    def __call__(self, domain_tag, input_word, hidden_states, cell_state_pre):
        p = self._fused[domain_tag]
        return _multicell_step(
            input_word, hidden_states, cell_state_pre,
            p['wx'], p['wh'], p['b'], p['wbd'], p['wtil'], p['vmat'], p['rmat'],
            p['smat'], p['teye'],
            hidden_size=self.hidden_size, n_cells=p['n_cells'])

    def forward_sequence(self, domain_tag, x_seq, h0, c0):
        """Fused RNN loop: (h_t, c_t) = layer(x_t, h_{t-1}, c_{t-1}) for t in [0, T)."""
        p = self._fused[domain_tag]
        return _multicell_sequence(
            x_seq, h0, c0,
            p['wx'], p['wh_p'], p['b'], p['wbd'], p['wtil'], p['vmat'], p['rmat'],
            p['smat'], p['teye_p'],
            hidden_size=self.hidden_size, n_cells=p['n_cells'])


# ---------------------------------------------------------------------------
# Pure-jnp f32 reference mirroring the PyTorch forward, for verification.
# ---------------------------------------------------------------------------
def _reference(mod, domain_tag, x, h, pre):
    H = mod.hidden_size
    mask = mod.entity_mask_S if domain_tag == 'Source' else mod.entity_mask_T
    idx = [i for i in range(mod.cell_num) if mask[i] == 1]

    nets = [(x @ mod.Wx_gate[c] + mod.b_gate[c] + h @ mod.Wh_gate[c])[None] for c in idx]
    net_cells = jnp.concatenate(nets, axis=0).transpose(1, 0, 2)      # (B, N, 2H)
    input_gates = jax.nn.sigmoid(net_cells[..., :H])
    cell_input = jnp.tanh(net_cells[..., H:])
    cell_states = input_gates * cell_input + (1.0 - input_gates) * pre[:, None, :]

    net_comp = x @ mod.Wx_comp + mod.b_comp + h @ mod.Wh_comp
    comp_ig = jax.nn.sigmoid(net_comp[:, :H])
    comp_og = jax.nn.sigmoid(net_comp[:, H:2 * H])
    comp_cc = jnp.tanh(net_comp[:, 2 * H:])

    if domain_tag == 'Source':
        W_ain, W_acell, v = mod.W_inproj_S, mod.W_inproj_S, mod.atten_v_S
    else:
        W_ain, W_acell, v = mod.W_inproj_T, mod.W_cellproj_T, mod.atten_v_T
    net_ai = comp_cc @ W_ain
    net_ac = cell_states @ W_acell
    scores = jnp.einsum('h,bch->bc', v, jnp.tanh(net_ai[:, None, :] + net_ac))
    probs = jax.nn.softmax(scores, axis=1)
    atten = jnp.einsum('bc,bch->bh', probs, cell_states)

    cell_state_c = (1.0 - comp_ig) * pre + comp_ig * atten
    hidden_out = comp_og * jnp.tanh(cell_state_c)
    return hidden_out, cell_state_c, cell_states, probs


if __name__ == "__main__":
    key = jax.random.PRNGKey(0)
    kp, kx, kh, kc, kseq = jax.random.split(key, 5)

    batch, input_size, hidden_size, cell_num, seq_len = 2, 16, 32, 4, 8
    entity_mask_S = [1, 0, 1, 1]   # 3 source cells
    entity_mask_T = [0, 1, 1, 0]   # 2 target cells

    mod = MultiCellLayerPallas(input_size, hidden_size, cell_num,
                               entity_mask_S, entity_mask_T, use_bias=True, key=kp)

    input_word = jax.random.normal(kx, (batch, input_size), jnp.float32)
    hidden_states = jax.random.normal(kh, (batch, hidden_size), jnp.float32)
    cell_state_pre = jax.random.normal(kc, (batch, hidden_size), jnp.float32)

    # --- single-step forward (MultiCell_layer.forward semantics), both domains ---
    tol = dict(atol=2e-2, rtol=2e-2)   # bf16 matmul operands, f32 accumulate
    for tag, n_sel in (('Source', sum(entity_mask_S)), ('Target', sum(entity_mask_T))):
        hid, csc, cs, probs = mod(tag, input_word, hidden_states, cell_state_pre)
        jax.block_until_ready((hid, csc, cs, probs))
        r_hid, r_csc, r_cs, r_probs = _reference(mod, tag, input_word, hidden_states,
                                                 cell_state_pre)
        assert hid.shape == (batch, hidden_size)
        assert csc.shape == (batch, hidden_size)
        assert cs.shape == (batch, n_sel, hidden_size)
        assert probs.shape == (batch, n_sel)
        assert jnp.allclose(hid, r_hid, **tol)
        assert jnp.allclose(csc, r_csc, **tol)
        assert jnp.allclose(cs, r_cs, **tol)
        assert jnp.allclose(probs, r_probs, **tol)

    # --- fused time-loop kernel: weights VMEM-resident across T grid steps ---
    x_seq = jax.random.normal(kseq, (seq_len, batch, input_size), jnp.float32)
    hs, cc_seq, states_seq, probs_seq = mod.forward_sequence(
        'Source', x_seq, hidden_states, cell_state_pre)
    jax.block_until_ready((hs, cc_seq, states_seq, probs_seq))

    stol = dict(atol=5e-2, rtol=5e-2)  # bf16 error accumulates slightly over the recurrence
    h_ref, c_ref = hidden_states, cell_state_pre
    for t in range(seq_len):
        r_hid, r_csc, r_cs, r_probs = _reference(mod, 'Source', x_seq[t], h_ref, c_ref)
        assert jnp.allclose(hs[t], r_hid, **stol)
        assert jnp.allclose(cc_seq[t], r_csc, **stol)
        assert jnp.allclose(states_seq[t], r_cs, **stol)
        assert jnp.allclose(probs_seq[t], r_probs, **stol)
        h_ref, c_ref = r_hid, r_csc

    print("KERNEL_OK")
</pallas_src>

<mosaic_0001>
module attributes {stable_mosaic.version = 11 : i64} {
  func.func @_step_kernel(%arg0: memref<2x16xf32, #tpu.memory_space<vmem>>, %arg1: memref<2x32xf32, #tpu.memory_space<vmem>>, %arg2: memref<2x32xf32, #tpu.memory_space<vmem>>, %arg3: memref<16x640xbf16, #tpu.memory_space<vmem>>, %arg4: memref<32x640xbf16, #tpu.memory_space<vmem>>, %arg5: memref<1x640xf32, #tpu.memory_space<vmem>>, %arg6: memref<128x256xbf16, #tpu.memory_space<vmem>>, %arg7: memref<128x256xbf16, #tpu.memory_space<vmem>>, %arg8: memref<256x128xbf16, #tpu.memory_space<vmem>>, %arg9: memref<128x128xbf16, #tpu.memory_space<vmem>>, %arg10: memref<128x128xbf16, #tpu.memory_space<vmem>>, %arg11: memref<32x128xf32, #tpu.memory_space<vmem>>, %arg12: memref<2x512xf32, #tpu.memory_space<vmem>>) attributes {dimension_semantics = [], scalar_prefetch = 0 : i64, scratch_operands = 0 : i64, tpu.core_type = #tpu.core_type<tc>} {
    %c0 = arith.constant 0 : index
    %c0_0 = arith.constant 0 : index
    %0 = vector.load %arg0[%c0, %c0_0] : memref<2x16xf32, #tpu.memory_space<vmem>>, vector<2x16xf32>
    %c0_1 = arith.constant 0 : index
    %c0_2 = arith.constant 0 : index
    %1 = vector.load %arg1[%c0_1, %c0_2] : memref<2x32xf32, #tpu.memory_space<vmem>>, vector<2x32xf32>
    %c0_3 = arith.constant 0 : index
    %c0_4 = arith.constant 0 : index
    %2 = vector.load %arg2[%c0_3, %c0_4] : memref<2x32xf32, #tpu.memory_space<vmem>>, vector<2x32xf32>
    %c0_5 = arith.constant 0 : index
    %c0_6 = arith.constant 0 : index
    %3 = vector.load %arg3[%c0_5, %c0_6] : memref<16x640xbf16, #tpu.memory_space<vmem>>, vector<16x640xbf16>
    %c0_7 = arith.constant 0 : index
    %c0_8 = arith.constant 0 : index
    %4 = vector.load %arg4[%c0_7, %c0_8] : memref<32x640xbf16, #tpu.memory_space<vmem>>, vector<32x640xbf16>
    %c0_9 = arith.constant 0 : index
    %c0_10 = arith.constant 0 : index
    %5 = vector.load %arg5[%c0_9, %c0_10] : memref<1x640xf32, #tpu.memory_space<vmem>>, vector<1x640xf32>
    %c0_11 = arith.constant 0 : index
    %c0_12 = arith.constant 0 : index
    %6 = vector.load %arg6[%c0_11, %c0_12] : memref<128x256xbf16, #tpu.memory_space<vmem>>, vector<128x256xbf16>
    %c0_13 = arith.constant 0 : index
    %c0_14 = arith.constant 0 : index
    %7 = vector.load %arg7[%c0_13, %c0_14] : memref<128x256xbf16, #tpu.memory_space<vmem>>, vector<128x256xbf16>
    %c0_15 = arith.constant 0 : index
    %c0_16 = arith.constant 0 : index
    %8 = vector.load %arg8[%c0_15, %c0_16] : memref<256x128xbf16, #tpu.memory_space<vmem>>, vector<256x128xbf16>
    %c0_17 = arith.constant 0 : index
    %c0_18 = arith.constant 0 : index
    %9 = vector.load %arg9[%c0_17, %c0_18] : memref<128x128xbf16, #tpu.memory_space<vmem>>, vector<128x128xbf16>
    %c0_19 = arith.constant 0 : index
    %c0_20 = arith.constant 0 : index
    %10 = vector.load %arg10[%c0_19, %c0_20] : memref<128x128xbf16, #tpu.memory_space<vmem>>, vector<128x128xbf16>
    %c0_21 = arith.constant 0 : index
    %c0_22 = arith.constant 0 : index
    %11 = vector.load %arg11[%c0_21, %c0_22] : memref<32x128xf32, #tpu.memory_space<vmem>>, vector<32x128xf32>
    %12 = arith.truncf %0 : vector<2x16xf32> to vector<2x16xbf16>
    %cst = arith.constant dense<0.000000e+00> : vector<2x640xf32>
    %13 = tpu.matmul %12, %3, %cst {dimension_numbers = #tpu.dot_dimension_numbers<[1], [0], [0], [1], [0, 0, 1, 1], [], []>} : vector<2x16xbf16>, vector<16x640xbf16>, vector<2x640xf32> -> vector<2x640xf32>
    %14 = arith.truncf %1 : vector<2x32xf32> to vector<2x32xbf16>
    %cst_23 = arith.constant dense<0.000000e+00> : vector<2x640xf32>
    %15 = tpu.matmul %14, %4, %cst_23 {dimension_numbers = #tpu.dot_dimension_numbers<[1], [0], [0], [1], [0, 0, 1, 1], [], []>} : vector<2x32xbf16>, vector<32x640xbf16>, vector<2x640xf32> -> vector<2x640xf32>
    %16 = arith.addf %13, %15 : vector<2x640xf32>
    %17 = vector.broadcast %5 : vector<1x640xf32> to vector<2x640xf32>
    %18 = arith.addf %16, %17 : vector<2x640xf32>
    %19 = vector.extract_strided_slice %18 {offsets = [0, 0], sizes = [2, 128], strides = [1, 1]} : vector<2x640xf32> to vector<2x128xf32>
    %20 = arith.negf %19 : vector<2x128xf32>
    %21 = math.exp %20 : vector<2x128xf32>
    %cst_24 = arith.constant 1.000000e+00 : f32
    %22 = vector.broadcast %cst_24 : f32 to vector<2x128xf32>
    %23 = arith.addf %22, %21 : vector<2x128xf32>
    %24 = arith.divf %22, %23 : vector<2x128xf32>
    %25 = vector.extract_strided_slice %18 {offsets = [0, 128], sizes = [2, 128], strides = [1, 1]} : vector<2x640xf32> to vector<2x128xf32>
    %26 = math.tanh %25 : vector<2x128xf32>
    %cst_25 = arith.constant dense<0.000000e+00> : vector<2x128xf32>
    %27 = tpu.matmul %2, %11, %cst_25 {dimension_numbers = #tpu.dot_dimension_numbers<[1], [0], [0], [1], [0, 0, 1, 1], [], []>} : vector<2x32xf32>, vector<32x128xf32>, vector<2x128xf32> -> vector<2x128xf32>
    %28 = arith.mulf %24, %26 : vector<2x128xf32>
    %cst_26 = arith.constant 1.000000e+00 : f32
    %29 = vector.broadcast %cst_26 : f32 to vector<2x128xf32>
    %30 = arith.subf %29, %24 : vector<2x128xf32>
    %31 = arith.mulf %30, %27 : vector<2x128xf32>
    %32 = arith.addf %28, %31 : vector<2x128xf32>
    %33 = vector.extract_strided_slice %18 {offsets = [0, 256], sizes = [2, 128], strides = [1, 1]} : vector<2x640xf32> to vector<2x128xf32>
    %34 = arith.negf %33 : vector<2x128xf32>
    %35 = math.exp %34 : vector<2x128xf32>
    %cst_27 = arith.constant 1.000000e+00 : f32
    %36 = vector.broadcast %cst_27 : f32 to vector<2x128xf32>
    %37 = arith.addf %36, %35 : vector<2x128xf32>
    %38 = arith.divf %36, %37 : vector<2x128xf32>
    %39 = vector.extract_strided_slice %18 {offsets = [0, 384], sizes = [2, 128], strides = [1, 1]} : vector<2x640xf32> to vector<2x128xf32>
    %40 = arith.negf %39 : vector<2x128xf32>
    %41 = math.exp %40 : vector<2x128xf32>
    %cst_28 = arith.constant 1.000000e+00 : f32
    %42 = vector.broadcast %cst_28 : f32 to vector<2x128xf32>
    %43 = arith.addf %42, %41 : vector<2x128xf32>
    %44 = arith.divf %42, %43 : vector<2x128xf32>
    %45 = vector.extract_strided_slice %18 {offsets = [0, 512], sizes = [2, 128], strides = [1, 1]} : vector<2x640xf32> to vector<2x128xf32>
    %46 = math.tanh %45 : vector<2x128xf32>
    %47 = arith.truncf %46 : vector<2x128xf32> to vector<2x128xbf16>
    %cst_29 = arith.constant dense<0.000000e+00> : vector<2x256xf32>
    %48 = tpu.matmul %47, %7, %cst_29 {dimension_numbers = #tpu.dot_dimension_numbers<[1], [0], [0], [1], [0, 0, 1, 1], [], []>} : vector<2x128xbf16>, vector<128x256xbf16>, vector<2x256xf32> -> vector<2x256xf32>
    %49 = arith.truncf %32 : vector<2x128xf32> to vector<2x128xbf16>
    %cst_30 = arith.constant dense<0.000000e+00> : vector<2x256xf32>
    %50 = tpu.matmul %49, %6, %cst_30 {dimension_numbers = #tpu.dot_dimension_numbers<[1], [0], [0], [1], [0, 0, 1, 1], [], []>} : vector<2x128xbf16>, vector<128x256xbf16>, vector<2x256xf32> -> vector<2x256xf32>
    %51 = arith.addf %48, %50 : vector<2x256xf32>
    %52 = math.tanh %51 : vector<2x256xf32>
    %53 = arith.truncf %52 : vector<2x256xf32> to vector<2x256xbf16>
    %cst_31 = arith.constant dense<0.000000e+00> : vector<2x128xf32>
    %54 = tpu.matmul %53, %8, %cst_31 {dimension_numbers = #tpu.dot_dimension_numbers<[1], [0], [0], [1], [0, 0, 1, 1], [], []>} : vector<2x256xbf16>, vector<256x128xbf16>, vector<2x128xf32> -> vector<2x128xf32>
    %55 = tpu.iota {dimensions = array<i32: 1>} : vector<2x128xi32>
    %c3_i32 = arith.constant 3 : i32
    %56 = vector.broadcast %c3_i32 : i32 to vector<2x128xi32>
    %57 = arith.cmpi slt, %55, %56 : vector<2x128xi32>
    %cst_32 = arith.constant -1.000000e+30 : f32
    %58 = vector.broadcast %cst_32 : f32 to vector<2x128xf32>
    %59 = arith.select %57, %54, %58 : vector<2x128xi1>, vector<2x128xf32>
    %cst_33 = arith.constant dense<0xFF800000> : vector<2xf32>
    %60 = vector.multi_reduction <maximumf>, %59, %cst_33 [1] : vector<2x128xf32> to vector<2xf32>
    %61 = vector.shape_cast %60 : vector<2xf32> to vector<2x1xf32>
    %62 = vector.broadcast %61 : vector<2x1xf32> to vector<2x128xf32>
    %63 = arith.subf %59, %62 : vector<2x128xf32>
    %64 = math.exp %63 : vector<2x128xf32>
    %cst_34 = arith.constant dense<0.000000e+00> : vector<2xf32>
    %65 = vector.multi_reduction <add>, %64, %cst_34 [1] : vector<2x128xf32> to vector<2xf32>
    %66 = vector.shape_cast %65 : vector<2xf32> to vector<2x1xf32>
    %67 = tpu.reciprocal %66 {approx = true} : vector<2x1xf32> -> vector<2x1xf32>
    %68 = vector.broadcast %67 : vector<2x1xf32> to vector<2x128xf32>
    %69 = arith.mulf %64, %68 : vector<2x128xf32>
    %70 = arith.truncf %69 : vector<2x128xf32> to vector<2x128xbf16>
    %cst_35 = arith.constant dense<0.000000e+00> : vector<2x128xf32>
    %71 = tpu.matmul %70, %9, %cst_35 {dimension_numbers = #tpu.dot_dimension_numbers<[1], [0], [0], [1], [0, 0, 1, 1], [], []>} : vector<2x128xbf16>, vector<128x128xbf16>, vector<2x128xf32> -> vector<2x128xf32>
    %72 = arith.mulf %71, %32 : vector<2x128xf32>
    %73 = arith.truncf %72 : vector<2x128xf32> to vector<2x128xbf16>
    %cst_36 = arith.constant dense<0.000000e+00> : vector<2x128xf32>
    %74 = tpu.matmul %73, %10, %cst_36 {dimension_numbers = #tpu.dot_dimension_numbers<[1], [0], [0], [1], [0, 0, 1, 1], [], []>} : vector<2x128xbf16>, vector<128x128xbf16>, vector<2x128xf32> -> vector<2x128xf32>
    %cst_37 = arith.constant 1.000000e+00 : f32
    %75 = vector.broadcast %cst_37 : f32 to vector<2x128xf32>
    %76 = arith.subf %75, %38 : vector<2x128xf32>
    %77 = arith.mulf %76, %27 : vector<2x128xf32>
    %78 = arith.mulf %38, %74 : vector<2x128xf32>
    %79 = arith.addf %77, %78 : vector<2x128xf32>
    %80 = math.tanh %79 : vector<2x128xf32>
    %81 = arith.mulf %44, %80 : vector<2x128xf32>
    %82 = tpu.concatenate %81, %79, %32, %69 in 1 : vector<2x128xf32>, vector<2x128xf32>, vector<2x128xf32>, vector<2x128xf32> -> vector<2x512xf32>
    %c0_38 = arith.constant 0 : index
    %c0_39 = arith.constant 0 : index
    %83 = vector.load %arg12[%c0_38, %c0_39] : memref<2x512xf32, #tpu.memory_space<vmem>>, vector<2x512xf32>
    tpu.vector_store %arg12[%c0_38, %c0_39], %82 {strides = array<i32>} : memref<2x512xf32, #tpu.memory_space<vmem>>, vector<2x512xf32>,
    return
  }
}

</mosaic_0001>

<bundles_post_ra>
// kernel: _multicell_step.1
= control target key start
LH: loop header
LB: loop body
LE: loop exit
PB: predicated region body
PF: predicated region fallthrough
CT: control target
= control target key end

     0   :  { %17 = vsyncpa [#allocation3], 0  ;;  %s2196_s0 = inlined_call_operand.hbm [shape: f32[2,16], index: 0, kind: input, shape index: {}]   ;;  %s2197_s1 = inlined_call_operand.vmem [shape: f32[2,32], index: 1, kind: input, shape index: {}]   ;;  %s2198_s2 = inlined_call_operand.vmem [shape: f32[2,32], index: 2, kind: input, shape index: {}]   ;;  %s2199_s3 = inlined_call_operand.hbm [shape: bf16[16,640], index: 3, kind: input, shape index: {}]   ;;  %s2200_s4 = inlined_call_operand.hbm [shape: bf16[32,640], index: 4, kind: input, shape index: {}]   ;;  %s2201_s5 = inlined_call_operand.vmem [shape: f32[1,640], index: 5, kind: input, shape index: {}]   ;;  %s2202_s6 = inlined_call_operand.hbm [shape: bf16[128,256], index: 6, kind: input, shape index: {}]   ;;  %s2203_s7 = inlined_call_operand.hbm [shape: bf16[128,256], index: 7, kind: input, shape index: {}]   ;;  %s2204_s8 = inlined_call_operand.hbm [shape: bf16[256,128], index: 8, kind: input, shape index: {}]   ;;  %s2205_s9 = inlined_call_operand.hbm [shape: bf16[128,128], index: 9, kind: input, shape index: {}]   ;;  %s2206_s10 = inlined_call_operand.hbm [shape: bf16[128,128], index: 10, kind: input, shape index: {}]   ;;  %s2207_s11 = inlined_call_operand.vmem [shape: f32[32,128], index: 11, kind: input, shape index: {}]   ;;  %s2208_s12 = inlined_call_operand.vmem [shape: f32[2,512], index: 12, kind: output, shape index: {}]  }
   0x1   :  { %18 = vsyncpa [#allocation5], 0 }
   0x2   :  { %19 = vsyncpa [#allocation8], 0 }
   0x3   :  { %20 = vsyncpa [#allocation11], 0 }
   0x4   :  { %21 = vsyncpa [#allocation14], 0  ;;  %s1894_s21 = smov [#allocation4]   ;;  %s1708_s25 = scalar_lea.hbm %s2199_s3, 640 }
   0x5   :  { %s41_s22 = sshll.u32 %s1894_s21, 4  ;;  %p1709_p0 = scmp.ne.s32.totalorder %s2199_s3, %s1708_s25  ;;  %s42_s22 = int_to_ptr.vmem [resolvable:$true] %s41_s22 }
   0x6   :  { %p1712_p1 = scmp.lt.u32.totalorder %s1708_s25, %s2199_s3 }
   0x8   :  { %p1714_p2 = pnand %p1712_p1, %p1709_p0 }
   0xa   :  { %1717 = shalt.err (!%p1714_p2)
}
   0xb   :  { %s1718_s30 = scalar_lea.vmem %s42_s22, 640  ;;  %p1723_p4 = scmp.lt.s32.totalorder %s42_s22, %s42_s22 }
   0xc   :  { %p1719_p3 = scmp.ne.s32.totalorder %s42_s22, %s1718_s30  ;;  %p1724_p5 = scmp.lt.s32.totalorder %s1718_s30, %s1718_s30 }
   0xe   :  { %p1725_p6 = por %p1724_p5, %p1723_p4 }
  0x10   :  { %p1726_p7 = pnand %p1725_p6, %p1719_p3 }
  0x12   :  { %1729 = shalt.err (!%p1726_p7)
}
  0x13   :  { %s1895_s13 = smov 320   ;;  %s1896_s14 = smov 20  }
  0x14   :  { %47 = dma.hbm_to_vmem [thread:$0]  %s2199_s3, 640, %s42_s22, [#allocation5], %s1895_s13, %s1895_s13, %s1896_s14  }
  0x15   :  { %s1897_s17 = smov [#allocation7]   ;;  %s1730_s21 = scalar_lea.hbm %s2202_s6, 2048 }
  0x16   :  { %s67_s18 = sshll.u32 %s1897_s17, 4  ;;  %p1731_p8 = scmp.ne.s32.totalorder %s2202_s6, %s1730_s21  ;;  %s68_s18 = int_to_ptr.vmem [resolvable:$true] %s67_s18 }
  0x17   :  { %p1734_p9 = scmp.lt.u32.totalorder %s1730_s21, %s2202_s6 }
  0x19   :  { %p1736_p10 = pnand %p1734_p9, %p1731_p8 }
  0x1b   :  { %1739 = shalt.err (!%p1736_p10)
}
  0x1c   :  { %s1740_s27 = scalar_lea.vmem %s68_s18, 2048  ;;  %p1745_p12 = scmp.lt.s32.totalorder %s68_s18, %s68_s18 }
  0x1d   :  { %p1741_p11 = scmp.ne.s32.totalorder %s68_s18, %s1740_s27  ;;  %p1746_p13 = scmp.lt.s32.totalorder %s1740_s27, %s1740_s27 }
  0x1f   :  { %p1747_p0 = por %p1746_p13, %p1745_p12 }
  0x21   :  { %p1748_p1 = pnand %p1747_p0, %p1741_p11 }
  0x23   :  { %1751 = shalt.err (!%p1748_p1)
}
  0x24   :  { %s1898_s3 = smov 128   ;;  %s1899_s22 = smov 8  }
  0x25   :  { %73 = dma.hbm_to_vmem [thread:$0]  %s2202_s6, 2048, %s68_s18, [#allocation8], %s1898_s3, %s1898_s3, %s1899_s22  }
  0x26   :  { %s1900_s30 = smov [#allocation10]   ;;  %s1752_s19 = scalar_lea.hbm %s2204_s8, 2048 }
  0x27   :  { %s91_s15 = sshll.u32 %s1900_s30, 4  ;;  %p1753_p2 = scmp.ne.s32.totalorder %s2204_s8, %s1752_s19  ;;  %s92_s15 = int_to_ptr.vmem [resolvable:$true] %s91_s15 }
  0x28   :  { %p1756_p3 = scmp.lt.u32.totalorder %s1752_s19, %s2204_s8 }
  0x2a   :  { %p1758_p4 = pnand %p1756_p3, %p1753_p2 }
  0x2c   :  { %1761 = shalt.err (!%p1758_p4)
}
  0x2d   :  { %s1762_s25 = scalar_lea.vmem %s92_s15, 2048  ;;  %p1767_p6 = scmp.lt.s32.totalorder %s92_s15, %s92_s15 }
  0x2e   :  { %p1763_p5 = scmp.ne.s32.totalorder %s92_s15, %s1762_s25  ;;  %p1768_p7 = scmp.lt.s32.totalorder %s1762_s25, %s1762_s25 }
  0x30   :  { %p1769_p8 = por %p1768_p7, %p1767_p6 }
  0x32   :  { %p1770_p9 = pnand %p1769_p8, %p1763_p5 }
  0x34   :  { %1773 = shalt.err (!%p1770_p9)
}
  0x35   :  { %s1901_s6 = smov 64   ;;  %s1902_s18 = smov 4  }
  0x36   :  { %97 = dma.hbm_to_vmem [thread:$0]  %s2204_s8, 2048, %s92_s15, [#allocation11], %s1901_s6, %s1901_s6, %s1902_s18  }
  0x37   :  { %s1903_s28 = smov [#allocation2]   ;;  %s1904_s30 = smov [#allocation6]  }
  0x38   :  { %s28_s29 = sshll.u32 %s1903_s28, 4  ;;  %s53_s16 = sshll.u32 %s1904_s30, 4  ;;  %s29_s29 = int_to_ptr.vmem [resolvable:$true] %s28_s29  ;;  %s54_s16 = int_to_ptr.vmem [resolvable:$true] %s53_s16 }
  0x39   :  { %s1774_s20 = scalar_lea.hbm %s2196_s0, 32 }
  0x3a   :  { %p1775_p10 = scmp.ne.s32.totalorder %s2196_s0, %s1774_s20  ;;  %p1778_p11 = scmp.lt.u32.totalorder %s1774_s20, %s2196_s0 }
  0x3c   :  { %p1780_p12 = pnand %p1778_p11, %p1775_p10 }
  0x3e   :  { %1783 = shalt.err (!%p1780_p12)
}
  0x3f   :  { %s1784_s8 = scalar_lea.vmem %s29_s29, 32  ;;  %p1789_p0 = scmp.lt.s32.totalorder %s29_s29, %s29_s29 }
  0x40   :  { %p1785_p13 = scmp.ne.s32.totalorder %s29_s29, %s1784_s8  ;;  %p1790_p1 = scmp.lt.s32.totalorder %s1784_s8, %s1784_s8 }
  0x42   :  { %p1791_p2 = por %p1790_p1, %p1789_p0 }
  0x44   :  { %p1792_p3 = pnand %p1791_p2, %p1785_p13 }
  0x46   :  { %1795 = shalt.err (!%p1792_p3)
}
  0x47   :  { %31 = dma.hbm_to_vmem [thread:$0]  %s2196_s0, 32, %s29_s29, [#allocation3]  }
  0x48   :  { %s1796_s30 = scalar_lea.hbm %s2200_s4, 1280 }
  0x49   :  { %p1797_p4 = scmp.ne.s32.totalorder %s2200_s4, %s1796_s30  ;;  %p1800_p5 = scmp.lt.u32.totalorder %s1796_s30, %s2200_s4 }
  0x4b   :  { %p1802_p6 = pnand %p1800_p5, %p1797_p4 }
  0x4d   :  { %1805 = shalt.err (!%p1802_p6)
}
  0x4e   :  { %s1806_s23 = scalar_lea.vmem %s54_s16, 1280  ;;  %p1811_p8 = scmp.lt.s32.totalorder %s54_s16, %s54_s16 }
  0x4f   :  { %p1807_p7 = scmp.ne.s32.totalorder %s54_s16, %s1806_s23  ;;  %p1812_p9 = scmp.lt.s32.totalorder %s1806_s23, %s1806_s23 }
  0x51   :  { %p1813_p10 = por %p1812_p9, %p1811_p8 }
  0x53   :  { %p1814_p11 = pnand %p1813_p10, %p1807_p7 }
  0x55   :  { %1817 = shalt.err (!%p1814_p11)
}
  0x56   :  { %59 = dma.hbm_to_vmem [thread:$0]  %s2200_s4, 1280, %s54_s16, [#allocation5], %s1895_s13, %s1895_s13, %s1896_s14  }
  0x57   :  { %s1905_s24 = smov [#allocation9]   ;;  %s1906_s8 = smov [#allocation12]  }
  0x58   :  { %s79_s25 = sshll.u32 %s1905_s24, 4  ;;  %s103_s15 = sshll.u32 %s1906_s8, 4  ;;  %s80_s25 = int_to_ptr.vmem [resolvable:$true] %s79_s25  ;;  %s104_s15 = int_to_ptr.vmem [resolvable:$true] %s103_s15 }
  0x59   :  { %s1818_s28 = scalar_lea.hbm %s2203_s7, 2048 }
  0x5a   :  { %p1819_p12 = scmp.ne.s32.totalorder %s2203_s7, %s1818_s28  ;;  %p1822_p13 = scmp.lt.u32.totalorder %s1818_s28, %s2203_s7 }
  0x5c   :  { %p1824_p0 = pnand %p1822_p13, %p1819_p12 }
  0x5e   :  { %1827 = shalt.err (!%p1824_p0)
}
  0x5f   :  { %s1828_s4 = scalar_lea.vmem %s80_s25, 2048  ;;  %p1833_p2 = scmp.lt.s32.totalorder %s80_s25, %s80_s25 }
  0x60   :  { %p1829_p1 = scmp.ne.s32.totalorder %s80_s25, %s1828_s4  ;;  %p1834_p3 = scmp.lt.s32.totalorder %s1828_s4, %s1828_s4 }
  0x62   :  { %p1835_p4 = por %p1834_p3, %p1833_p2 }
  0x64   :  { %p1836_p5 = pnand %p1835_p4, %p1829_p1 }
  0x66   :  { %1839 = shalt.err (!%p1836_p5)
}
  0x67   :  { %85 = dma.hbm_to_vmem [thread:$0]  %s2203_s7, 2048, %s80_s25, [#allocation8], %s1898_s3, %s1898_s3, %s1899_s22  }
  0x68   :  { %s1840_s23 = scalar_lea.hbm %s2205_s9, 1024 }
  0x69   :  { %p1841_p6 = scmp.ne.s32.totalorder %s2205_s9, %s1840_s23  ;;  %p1844_p7 = scmp.lt.u32.totalorder %s1840_s23, %s2205_s9 }
  0x6b   :  { %p1846_p8 = pnand %p1844_p7, %p1841_p6 }
  0x6d   :  { %1849 = shalt.err (!%p1846_p8)
}
  0x6e   :  { %s1850_s26 = scalar_lea.vmem %s104_s15, 1024  ;;  %p1855_p10 = scmp.lt.s32.totalorder %s104_s15, %s104_s15 }
  0x6f   :  { %p1851_p9 = scmp.ne.s32.totalorder %s104_s15, %s1850_s26  ;;  %p1856_p11 = scmp.lt.s32.totalorder %s1850_s26, %s1850_s26 }
  0x71   :  { %p1857_p12 = por %p1856_p11, %p1855_p10 }
  0x73   :  { %p1858_p13 = pnand %p1857_p12, %p1851_p9 }
  0x75   :  { %1861 = shalt.err (!%p1858_p13)
}
  0x76   :  { %109 = dma.hbm_to_vmem [thread:$0]  %s2205_s9, 1024, %s104_s15, [#allocation11], %s1901_s6, %s1901_s6, %s1902_s18  }
  0x77   :  { %s1907_s22 = smov [#allocation13]   ;;  %s1862_s30 = scalar_lea.hbm %s2206_s10, 1024 }
  0x78   :  { %s115_s25 = sshll.u32 %s1907_s22, 4  ;;  %p1863_p0 = scmp.ne.s32.totalorder %s2206_s10, %s1862_s30  ;;  %s116_s25 = int_to_ptr.vmem [resolvable:$true] %s115_s25 }
  0x79   :  { %p1866_p1 = scmp.lt.u32.totalorder %s1862_s30, %s2206_s10 }
  0x7b   :  { %p1868_p2 = pnand %p1866_p1, %p1863_p0 }
  0x7d   :  { %1871 = shalt.err (!%p1868_p2)
}
  0x7e   :  { %s1872_s13 = scalar_lea.vmem %s116_s25, 1024  ;;  %p1877_p4 = scmp.lt.s32.totalorder %s116_s25, %s116_s25 }
  0x7f   :  { %p1873_p3 = scmp.ne.s32.totalorder %s116_s25, %s1872_s13  ;;  %p1878_p5 = scmp.lt.s32.totalorder %s1872_s13, %s1872_s13 }
  0x81   :  { %p1879_p6 = por %p1878_p5, %p1877_p4 }
  0x83   :  { %p1880_p7 = pnand %p1879_p6, %p1873_p3 }
  0x85   :  { %1883 = shalt.err (!%p1880_p7)
}
  0x86   :  { %121 = dma.hbm_to_vmem [thread:$0]  %s2206_s10, 1024, %s116_s25, [#allocation14], %s1901_s6, %s1901_s6, %s1902_s18  }
  0x87   :  { %1884 = dma.done.wait [#allocation3], 32  }
  0x88   :  { %1885 = vsyncadd [#allocation3], 4294967264 }
  0x89   :  { %1886 = dma.done.wait [#allocation5], 1920  }
  0x8a   :  { %1887 = vsyncadd [#allocation5], 4294965376 }
  0x8b   :  { %1888 = dma.done.wait [#allocation8], 4096  }
  0x8c   :  { %1889 = vsyncadd [#allocation8], 4294963200 }
  0x8d   :  { %1890 = dma.done.wait [#allocation11], 3072  }
  0x8e   :  { %1891 = vsyncadd [#allocation11], 4294964224 }
  0x8f   :  { %1892 = dma.done.wait [#allocation14], 1024  }
  0x90   :  { %1893 = vsyncadd [#allocation14], 4294966272  ;;  %v1908_v0 = vmov 0   ;;  %v1581_v1 = vld [vmem:[#allocation6 + $0x4] ss:$20 sps:$4 sm:$0xff]   ;;  %vm477_vm0 = vcmask 130048   ;;  %v604_v54 = vlaneseq }
  0x91   :  { %513 = vmatprep.mubr.bf16.mxu1 %v1908_v0  ;;  %361 = vmatprep.mubr.bf16.mxu0 %v1908_v0  ;;  %v1583_v2 = vld [vmem:[#allocation6] ss:$20 sps:$4 sm:$0xff]   ;;  %v1584_v3 = vld [vmem:[#allocation4 + $0x4] ss:$20 sps:$4 sm:$0xff]   ;;  %v1586_v4 = vld [vmem:[#allocation4] ss:$20 sps:$4 sm:$0xff]  }
  0x92   :  { %329 = vmatprep.subr.bf16.mxu0 %v1581_v1  ;;  %v1587_v5 = vld [vmem:[#allocation6 + $0x2c] ss:$20 sps:$4 sm:$0xff]   ;;  %v1589_v6 = vld [vmem:[#allocation6 + $0x28] ss:$20 sps:$4 sm:$0xff]   ;;  %481 = vmatprep.subr.bf16.mxu1 %v1584_v3  ;;  %v149_v7 = vld [vmem:[#allocation2] sm:$0x3] }
  0x93   :  { %330 = vmatpush1.bf16.msra.mxu0 %v1583_v2  ;;  %v150_v8 = vld [vmem:[%s2197_s1] sm:$0x3]  ;;  %482 = vmatpush1.bf16.msra.mxu1 %v1586_v4  ;;  %v271_v9 = vpack.c.bf16 %v149_v7, %v149_v7  ;;  %v1592_v10 = vld [vmem:[#allocation6 + $0xc] ss:$20 sps:$4 sm:$0xff]   ;;  %vm325_vm1 = vcmask 261120   ;;  %v1909_v12 = vmov 0.0  }
  0x94   :  { %331 = vmatprep.subr.bf16.mxu0 %v1587_v5  ;;  %v272_v11 = vpack.c.bf16 %v150_v8, %v150_v8  ;;  %1495 = vmatprep.subr.bf16.mxu1 %v1909_v12  ;;  %v1590_v13 = vld [vmem:[#allocation6 + $0x8] ss:$20 sps:$4 sm:$0xff]   ;;  %vm1910_vm2 = vmmov 0   ;;  %v1593_v16 = vld [vmem:[#allocation6 + $0x30] ss:$20 sps:$4 sm:$0xff]   ;;  %v1911_v23 = vmov 0.0|0.0  }
  0x95   :  { %v1595_v14 = vld [vmem:[#allocation6 + $0x34] ss:$20 sps:$4 sm:$0xff]   ;;  %v1596_v17 = vld [vmem:[#allocation6 + $0x10] ss:$20 sps:$4 sm:$0xff]   ;;  %v1597_v18 = vld [vmem:[#allocation6 + $0x38] ss:$20 sps:$4 sm:$0xff]  }
  0x96   :  { %1366 = vmatmul.mubr.msk.bf16.vlgmr.msra.gmra.mrb[0].mxu1 %vm477_vm0, %v271_v9  ;;  %v1598_v15 = vld [vmem:[#allocation4 + $0x10] ss:$20 sps:$4 sm:$0xff]   ;;  %v1601_v19 = vld [vmem:[#allocation4 + $0xc] ss:$20 sps:$4 sm:$0xff]   ;;  %v1599_v20 = vld [vmem:[#allocation4 + $0x8] ss:$20 sps:$4 sm:$0xff]  }
  0x97   :  { %332 = vmatpush1.bf16.msra.mxu0 %v1589_v6  ;;  %1497 = vmatprep.mubr.msk.bf16.mxu1 %vm1910_vm2, %v1909_v12  ;;  %v267_v21 = vld [vmem:[%s2207_s11] sm:$0xff]  ;;  %v268_v22 = vld [vmem:[%s2207_s11 + $0x8] sm:$0xff]  ;;  %v269_v24 = vld [vmem:[%s2207_s11 + $0x10] sm:$0xff]  ;;  %v2135_v55 = vshrl.u32 %v604_v54, 7  ;;  %vm1119_vm4 = vcmask 1041408  }
  0x98   :  { %370 = vmatprep.subr.bf16.mxu0 %v1592_v10  ;;  %1496 = vmatpush3.bf16.msra.mxu1 %v1598_v15  ;;  %v270_v25 = vld [vmem:[%s2207_s11 + $0x18] sm:$0xff]  ;;  %v1553_v26 = vpack.c.bf16 %v268_v22, %v267_v21  ;;  %v151_v28 = vld [vmem:[%s2198_s2] sm:$0x3]  ;;  %v1605_v32 = vld [vmem:[#allocation7 + $0x10] ss:$8 sps:$4 sm:$0xff]  }
  0x99   :  { %v1556_v27 = vpack.c.bf16 %v270_v25, %v269_v24  ;;  %v1604_v29 = vld [vmem:[#allocation7 + $0x4] ss:$8 sps:$4 sm:$0xff]   ;;  %v1602_v30 = vld [vmem:[#allocation7] ss:$8 sps:$4 sm:$0xff]   ;;  %v1607_v31 = vld [vmem:[#allocation7 + $0x14] ss:$8 sps:$4 sm:$0xff]  }
  0x9a   :  { %1358 = vmatmul.mubr.msk.bf16.vlgmr.msra.gmra.mrb[0].mxu0 %vm325_vm1, %v272_v11  ;;  %813 = vmatprep.subr.bf16.mxu1 %v1604_v29  ;;  %v1610_v33 = vld [vmem:[#allocation7 + $0x24] ss:$8 sps:$4 sm:$0xff]   ;;  %v1608_v34 = vld [vmem:[#allocation7 + $0x20] ss:$8 sps:$4 sm:$0xff]   ;;  %v1613_v35 = vld [vmem:[#allocation7 + $0x34] ss:$8 sps:$4 sm:$0xff]  }
  0x9b   :  { %371 = vmatpush1.bf16.msra.mxu0 %v1590_v13  ;;  %402 = vmatprep.mubr.bf16.mxu0 %v1908_v0  ;;  %v1611_v36 = vld [vmem:[#allocation7 + $0x30] ss:$8 sps:$4 sm:$0xff]   ;;  %v1616_v37 = vld [vmem:[#allocation7 + $0x44] ss:$8 sps:$4 sm:$0xff]   ;;  %v1614_v38 = vld [vmem:[#allocation7 + $0x40] ss:$8 sps:$4 sm:$0xff]  }
  0x9c   :  { %372 = vmatprep.subr.bf16.mxu0 %v1595_v14  ;;  %v1619_v39 = vld [vmem:[#allocation7 + $0x54] ss:$8 sps:$4 sm:$0xff]   ;;  %v1617_v40 = vld [vmem:[#allocation7 + $0x50] ss:$8 sps:$4 sm:$0xff]   ;;  %v1622_v41 = vld [vmem:[#allocation7 + $0x64] ss:$8 sps:$4 sm:$0xff]  }
  0x9d   :  { %v1620_v42 = vld [vmem:[#allocation7 + $0x60] ss:$8 sps:$4 sm:$0xff]   ;;  %v1625_v43 = vld [vmem:[#allocation7 + $0x74] ss:$8 sps:$4 sm:$0xff]   ;;  %v1623_v44 = vld [vmem:[#allocation7 + $0x70] ss:$8 sps:$4 sm:$0xff]  }
  0x9e   :  { %1498 = vmatmul.mubr.msk.bf16.vlgmr.msra.gmra.mrb[4].mxu1 %vm477_vm0, %v271_v9  ;;  %v1628_v45 = vld [vmem:[#allocation9 + $0x4] ss:$8 sps:$4 sm:$0xff]   ;;  %v1654_v50 = vld [vmem:[#allocation10 + $0x50] sm:$0xff]   ;;  %v1656_v52 = vld [vmem:[#allocation10 + $0x58] sm:$0xff]   ;;  %v606_v56 = vsub.s32 0, %v2135_v55 }
  0x9f   :  { %373 = vmatpush1.bf16.msra.mxu0 %v1593_v16  ;;  %845 = vmatprep.mubr.bf16.mxu1 %v1908_v0  ;;  %v1650_v46 = vld [vmem:[#allocation10 + $0x40] sm:$0xff]   ;;  %v1652_v48 = vld [vmem:[#allocation10 + $0x48] sm:$0xff]   ;;  %v1655_v51 = vld [vmem:[#allocation10 + $0x10] sm:$0xff]  }
  0xa0   :  { %1487 = vmatprep.subr.bf16.mxu0 %v1909_v12  ;;  %814 = vmatpush1.bf16.msra.mxu1 %v1602_v30  ;;  %v1651_v47 = vld [vmem:[#allocation10] sm:$0xff]   ;;  %v1653_v49 = vld [vmem:[#allocation10 + $0x8] sm:$0xff]   ;;  %v1657_v53 = vld [vmem:[#allocation10 + $0x18] sm:$0xff]  }
  0xa1   :  { %815 = vmatprep.subr.bf16.mxu1 %v1607_v31  ;;  %v2141_v57 = vld [vmem:[%s2201_s5] sm:$0x1f] }
  0xa2   :  { %1359 = vmatmul.mubr.msk.bf16.vlgmr.msra.gmra.mrb[4].mxu0 %vm325_vm1, %v272_v11  ;;  %v607_v60 = vrot.slane %v2141_v57, %v606_v56 }
  0xa3   :  { %1488 = vmatpush3.bf16.msra.mxu0 %v1596_v17  ;;  %1491 = vmatprep.mubr.msk.bf16.mxu0 %vm1910_vm2, %v1909_v12 }
  0xa4   :  { %1489 = vmatprep.subr.bf16.mxu0 %v1909_v12  ;;  %816 = vmatpush1.bf16.msra.mxu1 %v1605_v32 }
  0xa5   :  { %817 = vmatprep.subr.bf16.mxu1 %v1610_v33 }
  0xa7   :  { %1490 = vmatpush3.bf16.msra.mxu0 %v1597_v18 }
  0xa8   :  { %522 = vmatprep.subr.bf16.mxu0 %v1601_v19  ;;  %818 = vmatpush1.bf16.msra.mxu1 %v1608_v34 }
  0xa9   :  { %819 = vmatprep.subr.bf16.mxu1 %v1613_v35 }
  0xaa   :  { %1492 = vmatmul.mubr.msk.bf16.vlgmr.msra.gmra.mrb[8].mxu0 %vm325_vm1, %v272_v11 }
  0xab   :  { %523 = vmatpush1.bf16.msra.mxu0 %v1599_v20  ;;  %554 = vmatprep.mubr.bf16.mxu0 %v1908_v0 }
  0xac   :  { %1552 = vmatprep.subr.bf16.mxu0 %v1911_v23  ;;  %820 = vmatpush1.bf16.msra.mxu1 %v1611_v36 }
  0xad   :  { %821 = vmatprep.subr.bf16.mxu1 %v1616_v37 }
  0xb0   :  { %822 = vmatpush1.bf16.msra.mxu1 %v1614_v38 }
  0xb1   :  { %823 = vmatprep.subr.bf16.mxu1 %v1619_v39 }
  0xb2   :  { %1367 = vmatmul.mubr.msk.bf16.vlgmr.msra.gmra.mrb[12].mxu0 %vm477_vm0, %v271_v9  ;;  %v610_v9 = vsub.s32 1, %v2135_v55 }
  0xb3   :  { %1554 = vmatpush3.bf16.msra.mxu0 %v1553_v26  ;;  %1509 = vmatprep.mubr.msk.f32.mxu0 %vm1910_vm2, %v1909_v12 }
  0xb4   :  { %1555 = vmatprep.subr.bf16.mxu0 %v1911_v23  ;;  %824 = vmatpush1.bf16.msra.mxu1 %v1617_v40  ;;  %v611_v17 = vrot.slane %v2141_v57, %v610_v9  ;;  %v1647_v9 = vld [vmem:[#allocation9 + $0x70] ss:$8 sps:$4 sm:$0xff]  }
  0xb5   :  { %825 = vmatprep.subr.bf16.mxu1 %v1622_v41 }
  0xb7   :  { %1557 = vmatpush3.bf16.msra.mxu0 %v1556_v27  ;;  %v614_v27 = vsub.s32 2, %v2135_v55 }
  0xb8   :  { %826 = vmatpush1.bf16.msra.mxu1 %v1620_v42  ;;  %1447 = vmatprep.subr.bf16.mxu0 %v1650_v46 }
  0xb9   :  { %827 = vmatprep.subr.bf16.mxu1 %v1625_v43  ;;  %v615_v29 = vrot.slane %v2141_v57, %v614_v27 }
  0xba   :  { %1510 = vmatmul.mubr.msk.f32.vlgmr.msra.gmra.mrb[16].mxu0 %vm325_vm1, %v151_v28  ;;  %v618_v28 = vsub.s32 3, %v2135_v55 }
  0xbb   :  { %1448 = vmatpush3.bf16.msra.mxu0 %v1651_v47 }
  0xbc   :  { %828 = vmatpush1.bf16.msra.mxu1 %v1623_v44  ;;  %1449 = vmatprep.subr.bf16.mxu0 %v1652_v48  ;;  %v619_v31 = vrot.slane %v2141_v57, %v618_v28  ;;  %v1626_v48 = vld [vmem:[#allocation9] ss:$8 sps:$4 sm:$0xff]  }
  0xbd   :  { %934 = vmatprep.subr.bf16.mxu1 %v1628_v45 }
  0xbf   :  { %1450 = vmatpush3.bf16.msra.mxu0 %v1653_v49 }
  0xc0   :  { %1451 = vmatprep.subr.bf16.mxu0 %v1654_v50  ;;  %v1631_v50 = vld [vmem:[#allocation9 + $0x14] ss:$8 sps:$4 sm:$0xff]  }
  0xc3   :  { %1452 = vmatpush3.bf16.msra.mxu0 %v1655_v51  ;;  %v1629_v51 = vld [vmem:[#allocation9 + $0x10] ss:$8 sps:$4 sm:$0xff]  }
  0xc4   :  { %1453 = vmatprep.subr.bf16.mxu0 %v1656_v52 }
  0xc7   :  { %1454 = vmatpush3.bf16.msra.mxu0 %v1657_v53  ;;  %v1634_v53 = vld [vmem:[#allocation9 + $0x24] ss:$8 sps:$4 sm:$0xff]  }
 0x169   :  { %v515_v58 = vpop.f32.mrb[0].mxu1 }
 0x16a   :  { %v517_v59 = vpop.f32.mrb[1].mxu1 }
 0x16b   :  { %v519_v62 = vpop.f32.mrb[2].mxu1 }
 0x16c   :  { %v520_v2 = vpop.f32.mrb[3].mxu1  ;;  %v1635_v62 = vld [vmem:[#allocation9 + $0x30] ss:$8 sps:$4 sm:$0xff]  }
 0x16d   :  { %v363_v61 = vpop.f32.mrb[0].mxu0  ;;  %v1643_v2 = vld [vmem:[#allocation9 + $0x54] ss:$8 sps:$4 sm:$0xff]  }
 0x16e   :  { %v516_v63 = vadd.f32 %v515_v58, %v363_v61  ;;  %v365_v1 = vpop.f32.mrb[1].mxu0  ;;  %v622_v58 = vsub.s32 4, %v2135_v55 }
 0x16f   :  { %v518_v3 = vadd.f32 %v517_v59, %v365_v1  ;;  %v367_v4 = vpop.f32.mrb[2].mxu0  ;;  %v1632_v59 = vld [vmem:[#allocation9 + $0x20] ss:$8 sps:$4 sm:$0xff]  }
 0x170   :  { %v629_v5 = vadd.f32 %v607_v60, %v516_v63  ;;  %v368_v6 = vpop.f32.mrb[3].mxu0  ;;  %v1637_v60 = vld [vmem:[#allocation9 + $0x34] ss:$8 sps:$4 sm:$0xff]   ;;  %v623_v61 = vrot.slane %v2141_v57, %v622_v58  ;;  %v1640_v63 = vld [vmem:[#allocation9 + $0x44] ss:$8 sps:$4 sm:$0xff]  }
 0x171   :  { %v597_v8 = vpop.f32.mrb[4].mxu1  ;;  %v630_v19 = vadd.f32 %v611_v17, %v518_v3  ;;  %v1646_v57 = vld [vmem:[#allocation9 + $0x64] ss:$8 sps:$4 sm:$0xff]   ;;  %v1662_v17 = vld [vmem:[#allocation10 + $0x70] sm:$0xff]  }
 0x172   :  { %v1369_v7 = vmul.f32 -1.442695, %v629_v5  ;;  %v1499_v10 = vpop.f32.mrb[5].mxu1  ;;  %v1641_v5 = vld [vmem:[#allocation9 + $0x50] ss:$8 sps:$4 sm:$0xff]   ;;  %v1678_v58 = vld [vmem:[#allocation13 + $0x20] sm:$0xff]  }
 0x173   :  { %v600_v13 = vpop.f32.mrb[6].mxu1 }
 0x174   :  { %1682 = vpow2.f32 %v1369_v7  ;;  %v1500_v15 = vpop.f32.mrb[7].mxu1  ;;  %v1644_v7 = vld [vmem:[#allocation9 + $0x60] ss:$8 sps:$4 sm:$0xff]  }
 0x175   :  { %v404_v11 = vpop.f32.mrb[4].mxu0  ;;  %1684 = vtanh.f32 %v630_v19  ;;  %v1658_v13 = vld [vmem:[#allocation10 + $0x60] sm:$0xff]   ;;  %v1660_v15 = vld [vmem:[#allocation10 + $0x68] sm:$0xff]   ;;  %v1664_v19 = vld [vmem:[#allocation10 + $0x78] sm:$0xff]  }
 0x176   :  { %v406_v14 = vpop.f32.mrb[5].mxu0  ;;  %1455 = vmatprep.subr.bf16.mxu0 %v1658_v13 }
 0x177   :  { %v408_v16 = vpop.f32.mrb[6].mxu0 }
 0x178   :  { %v409_v18 = vpop.f32.mrb[7].mxu0  ;;  %v1661_v16 = vld [vmem:[#allocation10 + $0x28] sm:$0xff]  }
 0x179   :  { %v1663_v18 = vld [vmem:[#allocation10 + $0x30] sm:$0xff]  }
 0x17d   :  { %v445_v20 = vpop.f32.mrb[8].mxu0 }
 0x17e   :  { %v1683_v21 = vpop.eup %1682  ;;  %v1493_v22 = vpop.f32.mrb[9].mxu0  ;;  %v598_v23 = vadd.f32 %v597_v8, %v445_v20  ;;  %v1649_v8 = vld [vmem:[#allocation9 + $0x74] ss:$8 sps:$4 sm:$0xff]  }
 0x17f   :  { %v637_v24 = vadd.f32 1.0, %v1683_v21  ;;  %v448_v25 = vpop.f32.mrb[10].mxu0  ;;  %v1685_v39 = vpop.eup %1684  ;;  %v1665_v20 = vld [vmem:[#allocation10 + $0x38] sm:$0xff]  }
 0x180   :  { %v1494_v26 = vpop.f32.mrb[11].mxu0  ;;  %v633_v1 = vadd.f32 %v623_v61, %v598_v23 }
 0x181   :  { %1686 = vrcp.f32 %v637_v24 }
 0x185   :  { %v556_v30 = vpop.f32.mrb[12].mxu0 }
 0x186   :  { %v557_v32 = vadd.f32 %v556_v30, %v404_v11  ;;  %v558_v33 = vpop.f32.mrb[13].mxu0 }
 0x187   :  { %v559_v34 = vadd.f32 %v558_v33, %v406_v14  ;;  %v560_v35 = vpop.f32.mrb[14].mxu0  ;;  %v1659_v14 = vld [vmem:[#allocation10 + $0x20] sm:$0xff]  }
 0x188   :  { %v631_v36 = vadd.f32 %v615_v29, %v557_v32  ;;  %v561_v37 = vpop.f32.mrb[15].mxu0  ;;  %1456 = vmatpush3.bf16.msra.mxu0 %v1659_v14  ;;  %v1116_v29 = vand.u32 127, %v604_v54  ;;  %v1669_v54 = vld [vmem:[#allocation12 + $0x18] sm:$0xff]  }
 0x189   :  { %v2150_v38 = vadd.f32 %v619_v31, %v559_v34  ;;  %1457 = vmatprep.subr.bf16.mxu0 %v1660_v15  ;;  %v1666_v37 = vld [vmem:[#allocation12] sm:$0xff]  }
 0x18a   :  { %v1371_v40 = vmul.f32 -1.442695, %v631_v36  ;;  %vm1117_vm3 = vcmp.lt.s32.totalorder %v1116_v29, 3 }
 0x18b   :  { %v1687_v41 = vpop.eup %1686 }
 0x18c   :  { %1688 = vpow2.f32 %v1371_v40  ;;  %v714_v42 = vmul.f32 %v1687_v41, %v1685_v39  ;;  %v715_v43 = vsub.f32 1.0, %v1687_v41  ;;  %1458 = vmatpush3.bf16.msra.mxu0 %v1661_v16  ;;  %v1667_v39 = vld [vmem:[#allocation12 + $0x8] sm:$0xff]   ;;  %v1668_v40 = vld [vmem:[#allocation12 + $0x10] sm:$0xff]  }
 0x18d   :  { %v710_v44 = vpop.f32.mrb[16].mxu0  ;;  %1459 = vmatprep.subr.bf16.mxu0 %v1662_v17 }
 0x18e   :  { %v716_v45 = vmul.f32 %v715_v43, %v710_v44  ;;  %v1511_v46 = vpop.f32.mrb[17].mxu0 }
 0x18f   :  { %v1670_v46 = vld [vmem:[#allocation12 + $0x20] sm:$0xff]  }
 0x190   :  { %v2152_v47 = vadd.f32 %v716_v45, %v714_v42  ;;  %1460 = vmatpush3.bf16.msra.mxu0 %v1663_v18  ;;  %v1912_v18 = vmov 1983009808  }
 0x191   :  { %1461 = vmatprep.subr.bf16.mxu0 %v1664_v19  ;;  %v1323_v19 = vunpack.c.l.s4 %v1912_v18 }
 0x192   :  { %v732_v49 = vpack.c.bf16 %v2152_v47, %v2152_v47 }
 0x194   :  { %846 = vmatmul.mubr.bf16.vlgmr.msra.gmra.mrb[8].mxu1 %v732_v49  ;;  %1462 = vmatpush3.bf16.msra.mxu0 %v1665_v20  ;;  %v1672_v49 = vld [vmem:[#allocation12 + $0x30] sm:$0xff]   ;;  %v1324_v20 = vunpack.c.0.s8 %v1323_v19 }
 0x195   :  { %935 = vmatpush1.bf16.msra.mxu1 %v1626_v48  ;;  %966 = vmatprep.mubr.bf16.mxu1 %v1908_v0  ;;  %v1638_v0 = vld [vmem:[#allocation9 + $0x40] ss:$8 sps:$4 sm:$0xff]  }
 0x196   :  { %v1689_v52 = vpop.eup %1688  ;;  %936 = vmatprep.subr.bf16.mxu1 %v1631_v50  ;;  %1512 = vmatprep.subr.bf16.mxu0 %v1909_v12  ;;  %v1671_v48 = vld [vmem:[#allocation12 + $0x28] sm:$0xff]   ;;  %v1673_v50 = vld [vmem:[#allocation12 + $0x38] sm:$0xff]  }
 0x197   :  { %v721_v56 = vadd.f32 1.0, %v1689_v52  ;;  %v1675_v52 = vld [vmem:[#allocation13 + $0x8] sm:$0xff]  }
 0x199   :  { %1690 = vrcp.f32 %v721_v56  ;;  %937 = vmatpush1.bf16.msra.mxu1 %v1629_v51  ;;  %v1674_v51 = vld [vmem:[#allocation13] sm:$0xff]   ;;  %v1677_v56 = vld [vmem:[#allocation13 + $0x18] sm:$0xff]  }
 0x19a   :  { %938 = vmatprep.subr.bf16.mxu1 %v1634_v53  ;;  %1692 = vtanh.f32 %v633_v1  ;;  %v1676_v53 = vld [vmem:[#allocation13 + $0x10] sm:$0xff]  }
 0x19d   :  { %939 = vmatpush1.bf16.msra.mxu1 %v1632_v59  ;;  %v1679_v59 = vld [vmem:[#allocation13 + $0x28] sm:$0xff]  }
 0x19e   :  { %940 = vmatprep.subr.bf16.mxu1 %v1637_v60  ;;  %v1680_v60 = vld [vmem:[#allocation13 + $0x30] sm:$0xff]  }
 0x1a1   :  { %941 = vmatpush1.bf16.msra.mxu1 %v1635_v62 }
 0x1a2   :  { %942 = vmatprep.subr.bf16.mxu1 %v1640_v63 }
 0x1a3   :  { %v2159_v3 = vpop.eup %1690 }
 0x1a4   :  { %v1310_v4 = vsub.f32 1.0, %v2159_v3  ;;  %v1693_v10 = vpop.eup %1692 }
 0x1a5   :  { %943 = vmatpush1.bf16.msra.mxu1 %v1638_v0  ;;  %v731_v11 = vpack.c.bf16 %v1693_v10, %v1693_v10  ;;  %v1681_v0 = vld [vmem:[#allocation13 + $0x38] sm:$0xff]  }
 0x1a6   :  { %v2162_v6 = vmul.f32 %v1310_v4, %v710_v44  ;;  %944 = vmatprep.subr.bf16.mxu1 %v1643_v2 }
 0x1a9   :  { %945 = vmatpush1.bf16.msra.mxu1 %v1641_v5 }
 0x1aa   :  { %946 = vmatprep.subr.bf16.mxu1 %v1646_v57 }
 0x1ad   :  { %947 = vmatpush1.bf16.msra.mxu1 %v1644_v7 }
 0x1ae   :  { %948 = vmatprep.subr.bf16.mxu1 %v1649_v8 }
 0x1b1   :  { %949 = vmatpush1.bf16.msra.mxu1 %v1647_v9  ;;  %v1372_v9 = vmul.f32 -1.442695, %v2150_v38 }
 0x1b2   :  { %1532 = vmatprep.subr.bf16.mxu1 %v1909_v12 }
 0x1b4   :  { %967 = vmatmul.mubr.bf16.vlgmr.msra.gmra.mrb[8].mxu1 %v731_v11 }
 0x1b5   :  { %1548 = vmatprep.mubr.msk.bf16.mxu1 %vm1910_vm2, %v1909_v12  ;;  %1533 = vmatpush3.bf16.msra.mxu1 %v1674_v51 }
 0x1b6   :  { %1534 = vmatprep.subr.bf16.mxu1 %v1909_v12 }
 0x1b9   :  { %1535 = vmatpush3.bf16.msra.mxu1 %v1675_v52 }
 0x1ba   :  { %1536 = vmatprep.subr.bf16.mxu1 %v1909_v12 }
 0x1bd   :  { %1537 = vmatpush3.bf16.msra.mxu1 %v1676_v53 }
 0x1be   :  { %1538 = vmatprep.subr.bf16.mxu1 %v1909_v12 }
 0x1c1   :  { %1539 = vmatpush3.bf16.msra.mxu1 %v1677_v56 }
 0x1c2   :  { %1540 = vmatprep.subr.bf16.mxu1 %v1909_v12 }
 0x1c5   :  { %1541 = vmatpush3.bf16.msra.mxu1 %v1678_v58 }
 0x1c6   :  { %1542 = vmatprep.subr.bf16.mxu1 %v1909_v12 }
 0x1c9   :  { %1543 = vmatpush3.bf16.msra.mxu1 %v1679_v59 }
 0x1ca   :  { %1544 = vmatprep.subr.bf16.mxu1 %v1909_v12 }
 0x1cd   :  { %1545 = vmatpush3.bf16.msra.mxu1 %v1680_v60 }
 0x1ce   :  { %1546 = vmatprep.subr.bf16.mxu1 %v1909_v12 }
 0x1d1   :  { %1547 = vmatpush3.bf16.msra.mxu1 %v1681_v0 }
 0x287   :  { %v968_v21 = vpop.f32.mrb[8].mxu1 }
 0x288   :  { %1694 = vtanh.f32 %v968_v21  ;;  %v970_v22 = vpop.f32.mrb[9].mxu1 }
 0x289   :  { %1696 = vtanh.f32 %v970_v22  ;;  %v972_v23 = vpop.f32.mrb[10].mxu1 }
 0x28a   :  { %v973_v24 = vpop.f32.mrb[11].mxu1 }
 0x28b   :  { %v1327_v24 = vsub.s32 %v1324_v20, %v2135_v55 }
 0x292   :  { %v1695_v25 = vpop.eup %1694 }
 0x293   :  { %v1697_v26 = vpop.eup %1696  ;;  %v977_v28 = vpack.c.bf16 %v1695_v25, %v1695_v25 }
 0x294   :  { %v978_v27 = vpack.c.bf16 %v1697_v26, %v1697_v26 }
 0x296   :  { %1107 = vmatprep.mubr.bf16.mxu0 %v978_v27 }
 0x297   :  { %1108 = vmatmul.mubr.bf16.vlgmr.msra.gmra.mrb[20].mxu0 %v977_v28 }
 0x298   :  { %1528 = vmatprep.mubr.msk.bf16.mxu0 %vm1910_vm2, %v1909_v12  ;;  %1513 = vmatpush3.bf16.msra.mxu0 %v1666_v37 }
 0x299   :  { %1514 = vmatprep.subr.bf16.mxu0 %v1909_v12 }
 0x29c   :  { %1515 = vmatpush3.bf16.msra.mxu0 %v1667_v39 }
 0x29d   :  { %1516 = vmatprep.subr.bf16.mxu0 %v1909_v12 }
 0x2a0   :  { %1517 = vmatpush3.bf16.msra.mxu0 %v1668_v40 }
 0x2a1   :  { %1518 = vmatprep.subr.bf16.mxu0 %v1909_v12 }
 0x2a4   :  { %1519 = vmatpush3.bf16.msra.mxu0 %v1669_v54 }
 0x2a5   :  { %1520 = vmatprep.subr.bf16.mxu0 %v1909_v12 }
 0x2a8   :  { %1521 = vmatpush3.bf16.msra.mxu0 %v1670_v46 }
 0x2a9   :  { %1522 = vmatprep.subr.bf16.mxu0 %v1909_v12 }
 0x2ac   :  { %1523 = vmatpush3.bf16.msra.mxu0 %v1671_v48 }
 0x2ad   :  { %1524 = vmatprep.subr.bf16.mxu0 %v1909_v12 }
 0x2b0   :  { %1525 = vmatpush3.bf16.msra.mxu0 %v1672_v49 }
 0x2b1   :  { %1526 = vmatprep.subr.bf16.mxu0 %v1909_v12 }
 0x2b4   :  { %1527 = vmatpush3.bf16.msra.mxu0 %v1673_v50 }
 0x36a   :  { %v1463_v30 = vpop.f32.mrb[20].mxu0 }
 0x36b   :  { %v1464_v31 = vpop.f32.mrb[21].mxu0 }
 0x36c   :  { %v1465_v32 = vadd.f32 %v1464_v31, %v1463_v30  ;;  %v1466_v33 = vpop.f32.mrb[22].mxu0 }
 0x36d   :  { %v1467_v34 = vpop.f32.mrb[23].mxu0 }
 0x36e   :  { %v1118_v35 = vsel %vm1117_vm3, %v1465_v32, -1e+30 }
 0x36f   :  { %v1120_v36 = vsel %vm1119_vm4, %v1118_v35, -inf }
 0x370   :  { %1121 = vmax.xlane.f32.xlu0 %v1120_v36 }
 0x3fd   :  { %v1122_v41 = vpop.xlane.xlu0 %1121 }
 0x3fe   :  { %v1123_v42 = vsub.f32 %v1118_v35, %v1122_v41 }
 0x400   :  { %v1124_v43 = vmul.f32 1.442695, %v1123_v42 }
 0x402   :  { %1698 = vpow2.f32 %v1124_v43 }
 0x40c   :  { %v1699_v44 = vpop.eup %1698 }
 0x40d   :  { %v1126_v45 = vsel %vm1119_vm4, %v1699_v44, 0.0 }
 0x40e   :  { %1127 = vadd.xlane.f32.xlu0 %v1126_v45 }
 0x49b   :  { %v1128_v61 = vpop.xlane.xlu0 %1127 }
 0x49c   :  { %1700 = vrcp.f32 %v1128_v61 }
 0x49d   :  { %1702 = vpow2.f32 %v1372_v9 }
 0x4a6   :  { %v1701_v62 = vpop.eup %1700 }
 0x4a7   :  { %v1130_v63 = vmul.f32 %v1701_v62, %v1699_v44  ;;  %v1703_v12 = vpop.eup %1702 }
 0x4a8   :  { %v727_v10 = vadd.f32 1.0, %v1703_v12 }
 0x4a9   :  { %v1131_v1 = vpack.c.bf16 %v1130_v63, %v1130_v63  ;;  %v1321_v38 = vcombine.low %v2152_v47, %v1130_v63 }
 0x4aa   :  { %1704 = vrcp.f32 %v727_v10 }
 0x4ab   :  { %1529 = vmatmul.mubr.bf16.vlgmr.msra.gmra.mrb[24].mxu0 %v1131_v1 }
 0x4b4   :  { %v1705_v21 = vpop.eup %1704 }
 0x57e   :  { %v1214_v2 = vpop.f32.mrb[24].mxu0 }
 0x57f   :  { %v1220_v4 = vmul.f32 %v1214_v2, %v2152_v47  ;;  %v1530_v5 = vpop.f32.mrb[25].mxu0 }
 0x580   :  { %v1217_v57 = vpop.f32.mrb[26].mxu0 }
 0x581   :  { %v1221_v7 = vpack.c.bf16 %v1220_v4, %v1220_v4  ;;  %v1531_v8 = vpop.f32.mrb[27].mxu0 }
 0x583   :  { %1549 = vmatmul.mubr.bf16.vlgmr.msra.gmra.mrb[12].mxu1 %v1221_v7 }
 0x656   :  { %v1304_v11 = vpop.f32.mrb[12].mxu1 }
 0x657   :  { %v1312_v13 = vmul.f32 %v2159_v3, %v1304_v11  ;;  %v1550_v14 = vpop.f32.mrb[13].mxu1  ;;  %v1335_v3 = vrot.slane %v1321_v38, %v1327_v24 }
 0x658   :  { %v1307_v15 = vpop.f32.mrb[14].mxu1 }
 0x659   :  { %v1313_v16 = vadd.f32 %v1312_v13, %v2162_v6  ;;  %v1551_v17 = vpop.f32.mrb[15].mxu1 }
 0x65b   :  { %1706 = vtanh.f32 %v1313_v16 }
 0x665   :  { %v1707_v22 = vpop.eup %1706 }
 0x666   :  { %v1315_v23 = vmul.f32 %v1707_v22, %v1705_v21 }
 0x668   :  { %v1320_v25 = vcombine.low %v1315_v23, %v1313_v16 }
 0x66a   :  { %v1328_v26 = vrot.slane %v1320_v25, %v1327_v24 }
 0x66c   :  { %v1336_v27 = vcombine.low %v1328_v26, %v1335_v3 }
 0x66e   :  { %1338 = vst [vmem:[%s2208_s12] sm:$0xff] %v1336_v27 }
 0x66f   :  { %1343 = vsyncpa [#allocation3], 1 }
 0x670   :  { %1344 = vsyncpa [#allocation5], 1 }
 0x671   :  { %1345 = vsyncpa [#allocation8], 1 }
 0x672   :  { %1346 = vsyncpa [#allocation11], 1 }
 0x673   :  { %1347 = vsyncpa [#allocation14], 1 }

</bundles_post_ra>
